<compile_context>
chip_gen: v7x
topology: tpu7x:2x2x1
jax: 0.10.0
libtpu: 0.0.40
codegen_flags: <defaults>
</compile_context>

<pallas_src>
import functools
import math

import jax
import jax.numpy as jnp
from jax.experimental import pallas as pl
from jax.experimental.pallas import tpu as pltpu


def _fixed_embedding_kernel(idx_ref, tab_ref, o_ref):
    # idx_ref: (ts, 1)            int32 -- indices for this row tile
    # tab_ref: (3, C, d_model)    bf16  -- hi/mid/lo bf16 planes of f32 table
    # o_ref:   (ts, d_model)      f32   -- gathered embedding rows
    c = tab_ref.shape[1]

    # One-hot row selector built with cheap VPU compares: (ts,1) vs (1,C).
    col = jax.lax.broadcasted_iota(jnp.int32, (1, c), 1)
    onehot = jnp.where(idx_ref[...] == col, 1.0, 0.0).astype(jnp.bfloat16)

    # Gather on the MXU.  0/1 are exact in bf16, accumulation is f32, and the
    # three planes sum back to the f32 table (error ~2^-24), so this matches
    # the reference table to well below 1e-5 while using only bf16 matmuls.
    acc = jnp.dot(onehot, tab_ref[0], preferred_element_type=jnp.float32)
    acc += jnp.dot(onehot, tab_ref[1], preferred_element_type=jnp.float32)
    acc += jnp.dot(onehot, tab_ref[2], preferred_element_type=jnp.float32)
    o_ref[...] = acc


def _round_up(x, m):
    return (x + m - 1) // m * m


def _choose_tile_rows(n, d_model, c_pad):
    """Row-tile size from a VMEM budget; keeps >=2 grid steps when possible."""
    per_row = (
        2 * d_model * 4     # double-buffered f32 output block
        + 2 * 128 * 4       # (ts,1) int32 index block pads to 128 lanes, x2 buffers
        + 8 * c_pad         # one-hot / compare intermediates
        + 8 * d_model       # f32 accumulator temporaries
    )
    budget = 12 * 1024 * 1024          # comfortably below the 32 MiB limit set below
    ts_cap = max(8, (budget // per_row) // 8 * 8)
    # Keep the grid length >= 2 so v7x's two TensorCores both get work.
    ts_half = max(8, _round_up(-(-n // 2), 8))
    return max(8, min(ts_cap, ts_half))


def _build_table(c_in, d_model):
    """Exact pure-JAX port of the PyTorch table construction."""
    position = jnp.arange(0, c_in, dtype=jnp.float32)[:, None]
    div_term = jnp.exp(
        jnp.arange(0, d_model, 2, dtype=jnp.float32)
        * -(math.log(10000.0) / d_model)
    )
    w = jnp.zeros((c_in, d_model), dtype=jnp.float32)
    w = w.at[:, 0::2].set(jnp.sin(position * div_term))
    w = w.at[:, 1::2].set(jnp.cos(position * div_term))
    return w


@functools.partial(jax.jit, static_argnames=("c_in", "d_model"))
def fixed_embedding(x, *, c_in, d_model):
    """Equivalent of FixedEmbedding(c_in, d_model).forward(x).

    x: integer array of indices (any shape), values in [0, c_in).
    Returns float32 array of shape x.shape + (d_model,).
    """
    assert d_model % 2 == 0, "d_model must be even (same as the PyTorch module)"

    c_pad = _round_up(max(c_in, 1), 128)
    # VMEM-resident table targets the module's intended small-vocabulary use
    # (temporal / positional category embeddings).
    if 3 * c_pad * d_model * 2 > 8 * 1024 * 1024:
        raise ValueError(
            "fixed_embedding: c_in * d_model too large for a VMEM-resident "
            "table; use a gather-based path for huge vocabularies."
        )

    orig_shape = x.shape
    idx = x.reshape(-1).astype(jnp.int32)
    n = idx.shape[0]
    if n == 0:
        return jnp.zeros((*orig_shape, d_model), jnp.float32)

    ts = _choose_tile_rows(n, d_model, c_pad)
    num_tiles = pl.cdiv(n, ts)

    # Only the tiny index array gets padded; the output stays exactly (n, d)
    # and the ragged last block is handled by Pallas masked writes (no
    # pad -> out[:n] copy of the full result through HBM).
    n_idx = num_tiles * ts
    idx = jnp.pad(idx, (0, n_idx - n))[:, None]          # (n_idx, 1)

    # Exact f32 table, padded vocab rows, split into 3 bf16 planes.
    w = _build_table(c_in, d_model)
    w = jnp.pad(w, ((0, c_pad - c_in), (0, 0)))
    p0 = w.astype(jnp.bfloat16)
    r1 = w - p0.astype(jnp.float32)
    p1 = r1.astype(jnp.bfloat16)
    p2 = (r1 - p1.astype(jnp.float32)).astype(jnp.bfloat16)
    table_parts = jnp.stack([p0, p1, p2])                # (3, c_pad, d_model)

    out = pl.pallas_call(
        _fixed_embedding_kernel,
        out_shape=jax.ShapeDtypeStruct((n, d_model), jnp.float32),
        grid=(num_tiles,),
        in_specs=[
            pl.BlockSpec((ts, 1), lambda i: (i, 0)),
            # Constant block index: table DMA'd once, stays VMEM-resident.
            pl.BlockSpec((3, c_pad, d_model), lambda i: (0, 0, 0)),
        ],
        out_specs=pl.BlockSpec((ts, d_model), lambda i: (i, 0)),
        compiler_params=pltpu.CompilerParams(
            dimension_semantics=("parallel",),
            vmem_limit_bytes=32 * 1024 * 1024,
        ),
    )(idx, table_parts)

    return out.reshape(*orig_shape, d_model)


def _reference_fixed_embedding(x, c_in, d_model):
    """Pure-JAX port of the PyTorch module (table build + embedding lookup)."""
    return _build_table(c_in, d_model)[x]


if __name__ == "__main__":
    key = jax.random.PRNGKey(0)
    c_in, d_model = 24, 128  # e.g. hour-of-day embedding; lane-dense d_model

    # Case 1: typical (batch, seq) indices -> tile-divisible grid.
    batch, seq_len = 2, 8
    x = jax.random.randint(key, (batch, seq_len), 0, c_in, dtype=jnp.int32)
    out = jax.block_until_ready(fixed_embedding(x, c_in=c_in, d_model=d_model))
    ref = _reference_fixed_embedding(x, c_in, d_model)
    assert out.shape == (batch, seq_len, d_model), out.shape
    assert out.dtype == jnp.float32
    assert jnp.allclose(out, ref, atol=2e-5, rtol=1e-5), "mismatch vs reference"

    # Case 2: ragged row count -> exercises masked writes on the last block.
    x2 = jax.random.randint(jax.random.PRNGKey(1), (4, 5), 0, c_in, dtype=jnp.int32)
    out2 = jax.block_until_ready(fixed_embedding(x2, c_in=c_in, d_model=d_model))
    ref2 = _reference_fixed_embedding(x2, c_in, d_model)
    assert out2.shape == (4, 5, d_model), out2.shape
    assert jnp.allclose(out2, ref2, atol=2e-5, rtol=1e-5), "mismatch (ragged case)"

    print("KERNEL_OK")
</pallas_src>

<mosaic_0001>
module attributes {stable_mosaic.version = 11 : i64} {
  func.func @_fixed_embedding_kernel(%arg0: i32, %arg1: memref<8x1xi32, #tpu.memory_space<vmem>>, %arg2: memref<3x128x128xbf16, #tpu.memory_space<vmem>>, %arg3: memref<8x128xf32, #tpu.memory_space<vmem>>) attributes {dimension_semantics = [#tpu.dimension_semantics<parallel>], iteration_bounds = array<i64: 2>, scalar_prefetch = 0 : i64, scratch_operands = 0 : i64, tpu.core_type = #tpu.core_type<tc>, window_params = [{transform_indices = @transform_0, window_bounds = array<i64: 8, 1>}, {pipeline_mode = #tpu.pipeline_mode<synchronous>, transform_indices = @transform_1, window_bounds = array<i64: 3, 128, 128>}, {transform_indices = @transform_2, window_bounds = array<i64: 8, 128>}]} {
    %0 = tpu.iota {dimensions = array<i32: 1>} : vector<1x128xi32>
    %c0 = arith.constant 0 : index
    %c0_0 = arith.constant 0 : index
    %1 = vector.load %arg1[%c0, %c0_0] : memref<8x1xi32, #tpu.memory_space<vmem>>, vector<8x1xi32>
    %2 = vector.broadcast %1 : vector<8x1xi32> to vector<8x128xi32>
    %3 = vector.broadcast %0 : vector<1x128xi32> to vector<8x128xi32>
    %4 = arith.cmpi eq, %2, %3 : vector<8x128xi32>
    %cst = arith.constant 1.000000e+00 : f32
    %cst_1 = arith.constant 0.000000e+00 : f32
    %5 = vector.broadcast %cst : f32 to vector<8x128xf32>
    %6 = vector.broadcast %cst_1 : f32 to vector<8x128xf32>
    %7 = arith.select %4, %5, %6 : vector<8x128xi1>, vector<8x128xf32>
    %8 = arith.truncf %7 : vector<8x128xf32> to vector<8x128xbf16>
    %c0_2 = arith.constant 0 : index
    %c0_3 = arith.constant 0 : index
    %c0_4 = arith.constant 0 : index
    %9 = vector.load %arg2[%c0_2, %c0_3, %c0_4] : memref<3x128x128xbf16, #tpu.memory_space<vmem>>, vector<1x128x128xbf16>
    %10 = vector.shape_cast %9 : vector<1x128x128xbf16> to vector<128x128xbf16>
    %cst_5 = arith.constant dense<0.000000e+00> : vector<8x128xf32>
    %11 = tpu.matmul %8, %10, %cst_5 {dimension_numbers = #tpu.dot_dimension_numbers<[1], [0], [0], [1], [0, 0, 1, 1], [], []>} : vector<8x128xbf16>, vector<128x128xbf16>, vector<8x128xf32> -> vector<8x128xf32>
    %c1 = arith.constant 1 : index
    %c0_6 = arith.constant 0 : index
    %c0_7 = arith.constant 0 : index
    %12 = vector.load %arg2[%c1, %c0_6, %c0_7] : memref<3x128x128xbf16, #tpu.memory_space<vmem>>, vector<1x128x128xbf16>
    %13 = vector.shape_cast %12 : vector<1x128x128xbf16> to vector<128x128xbf16>
    %cst_8 = arith.constant dense<0.000000e+00> : vector<8x128xf32>
    %14 = tpu.matmul %8, %13, %cst_8 {dimension_numbers = #tpu.dot_dimension_numbers<[1], [0], [0], [1], [0, 0, 1, 1], [], []>} : vector<8x128xbf16>, vector<128x128xbf16>, vector<8x128xf32> -> vector<8x128xf32>
    %15 = arith.addf %11, %14 : vector<8x128xf32>
    %c2 = arith.constant 2 : index
    %c0_9 = arith.constant 0 : index
    %c0_10 = arith.constant 0 : index
    %16 = vector.load %arg2[%c2, %c0_9, %c0_10] : memref<3x128x128xbf16, #tpu.memory_space<vmem>>, vector<1x128x128xbf16>
    %17 = vector.shape_cast %16 : vector<1x128x128xbf16> to vector<128x128xbf16>
    %cst_11 = arith.constant dense<0.000000e+00> : vector<8x128xf32>
    %18 = tpu.matmul %8, %17, %cst_11 {dimension_numbers = #tpu.dot_dimension_numbers<[1], [0], [0], [1], [0, 0, 1, 1], [], []>} : vector<8x128xbf16>, vector<128x128xbf16>, vector<8x128xf32> -> vector<8x128xf32>
    %19 = arith.addf %15, %18 : vector<8x128xf32>
    %c0_12 = arith.constant 0 : index
    %c0_13 = arith.constant 0 : index
    %20 = vector.load %arg3[%c0_12, %c0_13] : memref<8x128xf32, #tpu.memory_space<vmem>>, vector<8x128xf32>
    tpu.vector_store %arg3[%c0_12, %c0_13], %19 {strides = array<i32>} : memref<8x128xf32, #tpu.memory_space<vmem>>, vector<8x128xf32>,
    return
  }
  func.func @transform_0(%arg0: i32) -> (i32, i32) {
    %c0_i32 = arith.constant 0 : i32
    %c0_i32_0 = arith.constant 0 : i32
    return %arg0, %c0_i32 : i32, i32
  }
  func.func @transform_1(%arg0: i32) -> (i32, i32, i32) {
    %c0_i32 = arith.constant 0 : i32
    %c0_i32_0 = arith.constant 0 : i32
    %c0_i32_1 = arith.constant 0 : i32
    %c0_i32_2 = arith.constant 0 : i32
    return %c0_i32, %c0_i32_0, %c0_i32_1 : i32, i32, i32
  }
  func.func @transform_2(%arg0: i32) -> (i32, i32) {
    %c0_i32 = arith.constant 0 : i32
    %c0_i32_0 = arith.constant 0 : i32
    return %arg0, %c0_i32 : i32, i32
  }
}

</mosaic_0001>

<bundles_post_ra>
// kernel: fixed_embedding.1
= control target key start
LH: loop header
LB: loop body
LE: loop exit
PB: predicated region body
PF: predicated region fallthrough
CT: control target
= control target key end

     0   :  { %7 = vsyncpa [#allocation3], 0  ;;  %s1066_s0 = inlined_call_operand.vmem [shape: s32[16,1], index: 0, kind: input, shape index: {}]   ;;  %s1067_s1 = inlined_call_operand.vmem [shape: bf16[3,128,128], index: 1, kind: input, shape index: {}]   ;;  %s1068_s2 = inlined_call_operand.hbm [shape: f32[16,128], index: 2, kind: output, shape index: {}]  }
   0x1   :  { %9 = vsyncpa [#allocation3 + $0x1], 0  ;;  %s854_s9 = smov 0   ;;  %s856_s10 = smov 0  }
   0x2   :  { %s858_s11 = smov 0   ;;  %s860_s12 = smov 0  }
   0x3 LB: > { %s875_s13 = sadd.s32 4294967295, %s832_s12   ;;  %s538_s14 = sadd.s32 4294967294, %s832_s12   ;;  %s832_s12 = sphi %s860_s12, %s1076_s12   ;;  %s828_s11 = sphi %s858_s11, %s1075_s11   ;;  %s824_s10 = sphi %s856_s10, %s1074_s10   ;;  %s820_s9 = sphi %s854_s9, %s1073_s9  }
   0x4   : > { %s879_s15 = sadd.s32 1, %s832_s12   ;;  %s69_s16 = sadd.s32 1, %s828_s11 }
   0x5   : > { %s66_s17 = ssub.s32 %s832_s12, %s879_s15  ;;  %p79_p0 = scmp.ne.s32.totalorder %s828_s11, %s824_s10 }
   0x6   : > { %p67_p1 = scmp.eq.s32.totalorder %s66_s17, 0  ;;  %p80_p2 = scmp.eq.s32.totalorder %s875_s13, 1 }
   0x7   : > { %p85_p3 = scmp.ne.s32.totalorder %s824_s10, %s820_s9  ;;  %p86_p4 = scmp.eq.s32.totalorder %s538_s14, 1 }
   0x8   : > { %s890_s18 = scalar_select %p67_p1, %s828_s11, %s69_s16  }
   0x9   : > { %p892_p5 = por %p80_p2, %p79_p0  ;;  %p896_p6 = por %p86_p4, %p85_p3 }
   0xa   : > { %p541_p7 = scmp.ge.s32.totalorder %s832_s12, 1  ;;  %p114_p8 = scmp.lt.s32.totalorder %s832_s12, 3 }
   0xc   : > { %p115_p9 = pnand %p541_p7, %p114_p8 }
   0xd   : > { %p135_p10 = scmp.lt.s32.totalorder (!%p115_p9), %s875_s13, 1  ;;  %v746_v0 = vld [vmem:[%s1067_s1] sm:$0xff] (!%p115_p9)   ;;  %v834_v1 = vmov (!%p115_p9), 0   ;;  %v835_v2 = vmov (!%p115_p9), 0.0   ;;  %v748_v4 = vld [vmem:[%s1067_s1 + $0x8] sm:$0xff] (!%p115_p9)   ;;  %v750_v7 = vld [vmem:[%s1067_s1 + $0x10] sm:$0xff] (!%p115_p9)   ;;  %v140_v19 = vlaneseq (!%p115_p9) }
   0xe   : > { %118 = sbr.rel (%p115_p9) target bundleno = 416 (0x1a0), region = 28  ;;  %745 = vset.pattern.permute.xlu0 (!%p115_p9), %v834_v1  ;;  %657 = vmatprep.subr.bf16.mxu0 (!%p115_p9), %v835_v2  ;;  %v747_v3 = vld [vmem:[%s1067_s1 + $0x40] sm:$0xff] (!%p115_p9)   ;;  %v749_v5 = vld [vmem:[%s1067_s1 + $0x48] sm:$0xff] (!%p115_p9)   ;;  %v751_v8 = vld [vmem:[%s1067_s1 + $0x50] sm:$0xff] (!%p115_p9)   ;;  %vm836_vm0 = vmmov (!%p115_p9), 0   ;;  %s132_s8 = sand.u32 (!%p115_p9), 1, %s824_s10  }
   0xf   : > { %637 = vmatprep.subr.bf16.mxu1 (!%p115_p9), %v835_v2  ;;  %658 = vmatpush3.bf16.msra.mxu0 (!%p115_p9), %v746_v0  ;;  %v752_v9 = vld [vmem:[%s1067_s1 + $0x18] sm:$0xff] (!%p115_p9)   ;;  %v754_v11 = vld [vmem:[%s1067_s1 + $0x20] sm:$0xff] (!%p115_p9)   ;;  %v756_v13 = vld [vmem:[%s1067_s1 + $0x28] sm:$0xff] (!%p115_p9)   ;;  %v141_v20 = vand.u32 (!%p115_p9), 127, %v140_v19  ;;  %v837_v24 = vmov (!%p115_p9), 1.0|1.0  }
  0x10   : > { %659 = vmatprep.subr.bf16.mxu0 (!%p115_p9), %v835_v2  ;;  %638 = vmatpush3.bf16.msra.mxu1 (!%p115_p9), %v747_v3  ;;  %v753_v10 = vld [vmem:[%s1067_s1 + $0x58] sm:$0xff] (!%p115_p9)   ;;  %v755_v12 = vld [vmem:[%s1067_s1 + $0x60] sm:$0xff] (!%p115_p9)   ;;  %v757_v14 = vld [vmem:[%s1067_s1 + $0x68] sm:$0xff] (!%p115_p9)   ;;  %s542_s14 = sshll.u32 (!%p115_p9), %s132_s8, 3  ;;  %s607_s16 = sshll.u32 (!%p115_p9), %s875_s13, 7 }
  0x11   : > { %639 = vmatprep.subr.bf16.mxu1 (!%p115_p9), %v835_v2  ;;  %653 = vmatprep.mubr.msk.bf16.mxu1 (!%p115_p9), %vm836_vm0, %v835_v2  ;;  %v758_v15 = vld [vmem:[%s1067_s1 + $0x30] sm:$0xff] (!%p115_p9)   ;;  %v760_v17 = vld [vmem:[%s1067_s1 + $0x38] sm:$0xff] (!%p115_p9)   ;;  %v762_v22 = vld [vmem:[%s1067_s1 + $0x80] sm:$0xff] (!%p115_p9)   ;;  %s134_s17 = scalar_lea.vmem (!%p115_p9), [#allocation2], %s542_s14  ;;  %s1024_s24 = scalar_lea.hbm (!%p115_p9), %s1068_s2, %s607_s16 }
  0x12   : > { %673 = vmatprep.mubr.msk.bf16.mxu0 (!%p115_p9), %vm836_vm0, %v835_v2  ;;  %v759_v16 = vld [vmem:[%s1067_s1 + $0x70] sm:$0xff] (!%p115_p9)   ;;  %v761_v18 = vld [vmem:[%s1067_s1 + $0x78] sm:$0xff] (!%p115_p9)   ;;  %v763_v25 = vld [vmem:[%s1067_s1 + $0x88] sm:$0xff] (!%p115_p9)   ;;  %s479_s21 = sshll.u32 (!%p115_p9), %s134_s17, 4  ;;  %s466_s25 = scalar_lea.sflag (!%p115_p9), [#allocation3], %s132_s8  ;;  %s1026_s21 = int_to_ptr.vmem [resolvable:$true] %s479_s21 }
  0x13   : > { %660 = vmatpush3.bf16.msra.mxu0 (!%p115_p9), %v748_v4  ;;  %v764_v26 = vld [vmem:[%s1067_s1 + $0x90] sm:$0xff] (!%p115_p9)   ;;  %v765_v27 = vld [vmem:[%s1067_s1 + $0x98] sm:$0xff] (!%p115_p9)   ;;  %v766_v28 = vld [vmem:[%s1067_s1 + $0xa0] sm:$0xff] (!%p115_p9)   ;;  %s838_s26 = smov (!%p115_p9), [#allocation2]  }
  0x14   : > { %661 = vmatprep.subr.bf16.mxu0 (!%p115_p9), %v835_v2  ;;  %640 = vmatpush3.bf16.msra.mxu1 (!%p115_p9), %v749_v5  ;;  %v767_v29 = vld [vmem:[%s1067_s1 + $0xa8] sm:$0xff] (!%p115_p9)   ;;  %v768_v30 = vld [vmem:[%s1067_s1 + $0xb0] sm:$0xff] (!%p115_p9)   ;;  %v769_v31 = vld [vmem:[%s1067_s1 + $0xb8] sm:$0xff] (!%p115_p9)   ;;  %s774_s27 = sshll.u32 (!%p115_p9), %s838_s26, 4  ;;  %s775_s27 = int_to_ptr.vmem [resolvable:$false] %s774_s27 }
  0x15   : > { %s136_s23 = scalar_select %p135_p10, %s875_s13, 1  ;;  %641 = vmatprep.subr.bf16.mxu1 %v835_v2 }
  0x16   : > { %s770_s13 = scalar_lea.vmem %s1026_s21, 128  ;;  %p777_p0 = scmp.lt.s32.totalorder %s1026_s21, %s775_s27 }
  0x17   : > { %s543_s28 = sshll.u32 %s136_s23, 3  ;;  %662 = vmatpush3.bf16.msra.mxu0 %v750_v7  ;;  %p771_p11 = scmp.ne.s32.totalorder %s1026_s21, %s770_s13 }
  0x18   : > { %s138_s5 = scalar_lea.vmem %s1066_s0, %s543_s28  ;;  %663 = vmatprep.subr.bf16.mxu0 %v835_v2  ;;  %642 = vmatpush3.bf16.msra.mxu1 %v751_v8  ;;  %s776_s28 = scalar_lea.vmem %s775_s27, 256 }
  0x19   : > { %v142_v6 = vld [vmem:[%s138_s5] sm:$0xff]  ;;  %643 = vmatprep.subr.bf16.mxu1 %v835_v2  ;;  %p772_p12 = pnand %p771_p11, %p892_p5  ;;  %p778_p1 = scmp.lt.s32.totalorder %s776_s28, %s770_s13 }
  0x1a   : > { %144 = vperm.xlu0 %745, %v142_v6  }
  0x1b   : > { %664 = vmatpush3.bf16.msra.mxu0 %v752_v9  ;;  %p773_p13 = pneg %p772_p12  ;;  %p779_p2 = por %p778_p1, %p777_p0 }
  0x1c   : > { %665 = vmatprep.subr.bf16.mxu0 %v835_v2  ;;  %644 = vmatpush3.bf16.msra.mxu1 %v753_v10 }
  0x1d   : > { %645 = vmatprep.subr.bf16.mxu1 %v835_v2  ;;  %p780_p3 = pnand %p779_p2, %p773_p13 }
  0x1f   : > { %666 = vmatpush3.bf16.msra.mxu0 %v754_v11 }
  0x20   : > { %667 = vmatprep.subr.bf16.mxu0 %v835_v2  ;;  %646 = vmatpush3.bf16.msra.mxu1 %v755_v12 }
  0x21   : > { %647 = vmatprep.subr.bf16.mxu1 %v835_v2 }
  0x23   : > { %668 = vmatpush3.bf16.msra.mxu0 %v756_v13 }
  0x24   : > { %669 = vmatprep.subr.bf16.mxu0 %v835_v2  ;;  %648 = vmatpush3.bf16.msra.mxu1 %v757_v14 }
  0x25   : > { %649 = vmatprep.subr.bf16.mxu1 %v835_v2 }
  0x27   : > { %670 = vmatpush3.bf16.msra.mxu0 %v758_v15 }
  0x28   : > { %671 = vmatprep.subr.bf16.mxu0 %v835_v2  ;;  %650 = vmatpush3.bf16.msra.mxu1 %v759_v16 }
  0x29   : > { %651 = vmatprep.subr.bf16.mxu1 %v835_v2 }
  0x2b   : > { %672 = vmatpush3.bf16.msra.mxu0 %v760_v17 }
  0x2c   : > { %677 = vmatprep.subr.bf16.mxu0 %v835_v2  ;;  %652 = vmatpush3.bf16.msra.mxu1 %v761_v18 }
  0x99   : > { %v145_v21 = vpop.permute.xlu0 %144 }
  0x9a   : > { %vm146_vm1 = vcmp.eq.s32.totalorder %v145_v21, %v141_v20 }
  0x9b   : > { %vm979_vm2 = vmpackc.low %vm146_vm1, %vm146_vm1 }
  0x9c   : > { %654 = vmatmul.mubr.msk.bf16.vlgmr.msra.gmra.mrb[0].mxu1 %vm979_vm2, %v837_v24  ;;  %674 = vmatmul.mubr.msk.bf16.vlgmr.msra.gmra.mrb[0].mxu0 %vm979_vm2, %v837_v24 }
  0x9d   : > { %678 = vmatpush3.bf16.msra.mxu0 %v762_v22  ;;  %693 = vmatprep.mubr.msk.bf16.mxu0 %vm836_vm0, %v835_v2 }
  0x9e   : > { %679 = vmatprep.subr.bf16.mxu0 %v835_v2 }
  0xa1   : > { %680 = vmatpush3.bf16.msra.mxu0 %v763_v25 }
  0xa2   : > { %681 = vmatprep.subr.bf16.mxu0 %v835_v2 }
  0xa5   : > { %682 = vmatpush3.bf16.msra.mxu0 %v764_v26 }
  0xa6   : > { %683 = vmatprep.subr.bf16.mxu0 %v835_v2 }
  0xa9   : > { %684 = vmatpush3.bf16.msra.mxu0 %v765_v27 }
  0xaa   : > { %685 = vmatprep.subr.bf16.mxu0 %v835_v2 }
  0xad   : > { %686 = vmatpush3.bf16.msra.mxu0 %v766_v28 }
  0xae   : > { %687 = vmatprep.subr.bf16.mxu0 %v835_v2 }
  0xb1   : > { %688 = vmatpush3.bf16.msra.mxu0 %v767_v29 }
  0xb2   : > { %689 = vmatprep.subr.bf16.mxu0 %v835_v2 }
  0xb5   : > { %690 = vmatpush3.bf16.msra.mxu0 %v768_v30 }
  0xb6   : > { %691 = vmatprep.subr.bf16.mxu0 %v835_v2 }
  0xb9   : > { %692 = vmatpush3.bf16.msra.mxu0 %v769_v31 }
  0xbc   : > { %694 = vmatmul.mubr.msk.bf16.vlgmr.msra.gmra.mrb[0].mxu0 %vm979_vm2, %v837_v24 }
 0x16f   : > { %v264_v32 = vpop.f32.mrb[0].mxu1 }
 0x170   : > { %v655_v33 = vpop.f32.mrb[1].mxu1 }
 0x171   : > { %v267_v34 = vpop.f32.mrb[2].mxu1 }
 0x172   : > { %v656_v35 = vpop.f32.mrb[3].mxu1 }
 0x18f   : > { %v457_v36 = vpop.f32.mrb[0].mxu0 }
 0x190   : > { %v697_v37 = vadd.f32 %v457_v36, %v264_v32  ;;  %v695_v38 = vpop.f32.mrb[1].mxu0 }
 0x191   : > { %v460_v39 = vpop.f32.mrb[2].mxu0 }
 0x192   : > { %464 = vst [vmem:[%s134_s17] sm:$0xff] %v697_v37  ;;  %v696_v40 = vpop.f32.mrb[3].mxu0 }
 0x193   : > { %783 = shalt.err (!%p780_p3)
}
 0x194   : > { %s784_s29 = scalar_lea.hbm %s1024_s24, 128  ;;  %s788_s4 = scalar_lea.hbm %s1068_s2, 256 }
 0x195   : > { %p785_p4 = scmp.ne.s32.totalorder %s1024_s24, %s784_s29  ;;  %p789_p9 = scmp.lt.u32.totalorder %s1024_s24, %s1068_s2 }
 0x196   : > { %p790_p10 = scmp.lt.u32.totalorder %s788_s4, %s784_s29  ;;  %p792_p12 = scmp.lt.u32.totalorder %s784_s29, %s1024_s24 }
 0x197   : > { %p786_p7 = pnand %p785_p4, %p892_p5 }
 0x198   : > { %p791_p11 = por %p790_p10, %p789_p9 }
 0x199   : > { %p787_p8 = pneg %p786_p7 }
 0x19a   : > { %p793_p13 = por %p792_p12, %p791_p11 }
 0x19c   : > { %p794_p0 = pnand %p793_p13, %p787_p8 }
 0x19e   : > { %797 = shalt.err (!%p794_p0)
}
 0x19f   : > { %702 = dma.vmem_to_hbm [thread:$0]  (%p892_p5), %s1026_s21, 128, %s1024_s24, %s466_s25  }
 0x1a0 PF: > { %p708_p1 = scmp.ge.s32.totalorder %s832_s12, 2  ;;  %s491_s7 = sand.u32 1, %s820_s9  }
 0x1a1   : > { %s492_s8 = scalar_lea.sflag [#allocation3], %s491_s7 }
 0x1a2   : > { %p705_p2 = pnand %p708_p1, %p896_p6 }
 0x1a4   : > { %815 = dma.done.wait (!%p705_p2), %s492_s8, 128  }
 0x1a5   : > { %817 = vsyncadd (!%p705_p2), %s492_s8, 4294967168  ;;  %p12_p3 = scmp.ge.s32.totalorder %s879_s15, 4   ;;  %s1073_s9 = smov %s824_s10 }
 0x1a6   : > { %s1074_s10 = smov %s828_s11  ;;  %s1075_s11 = smov %s890_s18 }
 0x1a7   : > { %s1076_s12 = smov %s879_s15  ;;  %14 = sbr.rel (!%p12_p3) target bundleno = 3 (0x3), region = 65 }
 0x1ae   :  { %497 = vsyncpa [#allocation3], 1 }
 0x1af   :  { %499 = vsyncpa [#allocation3 + $0x1], 1 }

</bundles_post_ra>
